<compile_context>
chip_gen: v5e
topology: v5e:2x2
jax: 0.10.0
libtpu: 0.0.40
codegen_flags: <defaults>
</compile_context>

<pallas_src>
from functools import partial

import jax
import jax.numpy as jnp
from jax.experimental import pallas as pl
from jax.experimental.pallas import tpu as pltpu

OUT_PAD = 128   # lane-dense output width: logp in lanes [0, n_act), value in lane n_act
ALIGN = 16      # sublane-tile row alignment for the packed weight slab (bf16-safe)


def make_gnn_kernel(has_edges, obs_dim_p, hid, n_act):
    """Kernel specialized on has_edges and on the (padded) static shapes."""
    f32 = jnp.float32
    r_w1 = 0
    r_wg = obs_dim_p
    r_w3x = r_wg + hid
    r_w3h = r_w3x + hid

    def body(obs_ref, adj_ref, wb_ref, bb_ref, wh_ref, bh_ref, out_ref):
        obs = obs_ref[...]                      # (M, obs_dim_p), MXU operand dtype
        cd = obs.dtype

        # fnn1 + tanh (elementwise in f32)
        w1 = wb_ref[r_w1:r_w1 + obs_dim_p, :]
        x = jnp.tanh(jnp.dot(obs, w1, preferred_element_type=f32) + bb_ref[0:1, :])
        x_c = x.astype(cd)

        if has_edges:
            # GCNConv: block-diag A_hat (BT graphs) @ (x @ Wg) + bg, then tanh.
            wg = wb_ref[r_wg:r_wg + hid, :]
            xw = jnp.dot(x_c, wg, preferred_element_type=f32).astype(cd)
            h = jnp.tanh(jnp.dot(adj_ref[...], xw, preferred_element_type=f32)
                         + bb_ref[1:2, :])
            h_c = h.astype(cd)
        else:
            # "if list(g.edges()) == []: h = x"  (statically specialized)
            h_c = x_c

        # fnn3 on cat([x, h], -1): split weights -> no in-kernel concat
        w3x = wb_ref[r_w3x:r_w3x + hid, :]
        w3h = wb_ref[r_w3h:r_w3h + hid, :]
        h2 = jnp.tanh(jnp.dot(x_c, w3x, preferred_element_type=f32)
                      + jnp.dot(h_c, w3h, preferred_element_type=f32)
                      + bb_ref[2:3, :])

        # fused policy + value heads -> one lane-dense (M, 128) slab:
        #   lanes [0, n_act) = log-probs, lane n_act = raw value,
        #   lanes > n_act hold by-product garbage (the wrapper slices them away).
        head = (jnp.dot(h2.astype(cd), wh_ref[...], preferred_element_type=f32)
                + bh_ref[...])

        lane = jax.lax.broadcasted_iota(jnp.int32, head.shape, 1)
        act_mask = lane < n_act

        # stable log_softmax over the first n_act lanes only
        m = jnp.max(jnp.where(act_mask, head, jnp.float32(-1e30)),
                    axis=-1, keepdims=True)
        z = head - m
        ez = jnp.exp(jnp.minimum(z, 0.0))            # real lanes have z <= 0
        denom = jnp.sum(jnp.where(act_mask, ez, 0.0), axis=-1, keepdims=True)
        logp = z - jnp.log(denom)

        # single lane-dense store: logp in lanes < n_act, raw value in lane n_act
        out_ref[...] = jnp.where(lane == n_act, head, logp)

    if has_edges:
        def kernel(obs_ref, adj_ref, wb_ref, bb_ref, wh_ref, bh_ref, out_ref):
            body(obs_ref, adj_ref, wb_ref, bb_ref, wh_ref, bh_ref, out_ref)
    else:
        def kernel(obs_ref, wb_ref, bb_ref, wh_ref, bh_ref, out_ref):
            body(obs_ref, None, wb_ref, bb_ref, wh_ref, bh_ref, out_ref)
    return kernel


@partial(jax.jit, static_argnames=("has_edges", "n_actions", "bt"))
def gnn_forward(obs, adj_hat, packed, *, has_edges, n_actions, bt=None):
    """obs: [B, N, obs_dim] f32; adj_hat: [B, N, N] f32 (None/ignored if not has_edges);
    packed: dict from pack_params.  Returns (logp [B,N,A] f32, v [B,N,1] f32)."""
    B, N, obs_dim = obs.shape
    hid = packed["wbody"].shape[1]
    out_pad = packed["whead"].shape[1]
    obs_dim_p = packed["wbody"].shape[0] - 3 * hid
    cd = packed["wbody"].dtype
    assert obs_dim <= obs_dim_p and n_actions + 1 <= out_pad

    # BT graphs per grid step: default fills a 128-row MXU tile (BT*N multiple of 8).
    if bt is None:
        bt = max(1, 128 // N)
        while (bt * N) % 8 != 0:
            bt += 1
    M = bt * N
    G = -(-B // bt)
    B_pad = G * bt

    # batch-pad + feature-pad + pre-cast obs, flattened to (B_pad*N, obs_dim_p) rows
    obs_p = jnp.zeros((B_pad, N, obs_dim_p), cd).at[:B, :, :obs_dim].set(obs.astype(cd))
    obs_flat = obs_p.reshape(B_pad * N, obs_dim_p)

    kernel = make_gnn_kernel(bool(has_edges), obs_dim_p, hid, n_actions)

    in_specs = [pl.BlockSpec((M, obs_dim_p), lambda g: (g, 0))]
    inputs = [obs_flat]
    adj_bytes = 0
    if has_edges:
        # Block-diagonal adjacency slab: BT per-graph [N,N] blocks on the diagonal of
        # one [M, M] tile -> GCN aggregation is a single full-width matmul per step.
        a = jnp.zeros((B_pad, N, N), jnp.float32).at[:B].set(adj_hat)
        a = a.reshape(G, bt, N, N)
        eye = jnp.eye(bt, dtype=jnp.float32)
        adj_bd = jnp.einsum("ij,girc->girjc", eye, a).reshape(G, M, M).astype(cd)
        in_specs.append(pl.BlockSpec((None, M, M), lambda g: (g, 0, 0)))
        inputs.append(adj_bd)
        adj_bytes = G * M * M * adj_bd.dtype.itemsize
    # packed parameter slabs: full arrays, resident across the whole grid
    for name in ("wbody", "bbody", "whead", "bhead"):
        p = packed[name]
        in_specs.append(pl.BlockSpec(p.shape, lambda g: (0, 0)))
        inputs.append(p)

    # advisory cost estimate so XLA can schedule/overlap this small custom call
    flops = 2 * B_pad * N * (obs_dim_p * hid
                             + (3 if has_edges else 2) * hid * hid
                             + hid * out_pad)
    if has_edges:
        flops += 2 * G * M * M * hid
    transcendentals = B_pad * N * ((3 if has_edges else 2) * hid + out_pad)
    param_bytes = sum(int(packed[n].size) * packed[n].dtype.itemsize
                      for n in ("wbody", "bbody", "whead", "bhead"))
    bytes_accessed = (int(obs_flat.size) * obs_flat.dtype.itemsize + adj_bytes
                      + B_pad * N * out_pad * 4 + param_bytes)

    out = pl.pallas_call(
        kernel,
        grid=(G,),
        in_specs=in_specs,
        out_specs=pl.BlockSpec((M, out_pad), lambda g: (g, 0)),
        out_shape=jax.ShapeDtypeStruct((B_pad * N, out_pad), jnp.float32),
        compiler_params=pltpu.CompilerParams(
            dimension_semantics=("parallel",),          # megacore: split graph groups
            vmem_limit_bytes=32 * 1024 * 1024),         # explicit; v5e default is 16 MiB
        cost_estimate=pl.CostEstimate(flops=flops,
                                      transcendentals=transcendentals,
                                      bytes_accessed=bytes_accessed),
    )(*inputs)

    out = out.reshape(B_pad, N, out_pad)[:B]
    logp = out[..., :n_actions]
    v = out[..., n_actions:n_actions + 1]
    return logp, v


# ------------------------- plain-JAX glue (setup) -------------------------

def build_gcn_adj(edge_index, num_nodes):
    """Normalized adjacency A_hat = D^{-1/2}(A + I)D^{-1/2}, aggregation at dst,
    matching torch_geometric gcn_norm(add_self_loops=True)."""
    src, dst = edge_index
    A = jnp.zeros((num_nodes, num_nodes), jnp.float32).at[dst, src].add(1.0)
    A = A + jnp.eye(num_nodes, dtype=jnp.float32)
    deg = jnp.sum(A, axis=1)
    dinv = jnp.where(deg > 0, 1.0 / jnp.sqrt(deg), 0.0)
    return dinv[:, None] * A * dinv[None, :]


def init_params(key, obs_shape, hid_size, n_actions):
    """Deterministic PyTorch-Linear-style init (uniform +/- 1/sqrt(fan_in)).
    All weights stored already transposed to [in, out]."""
    ks = jax.random.split(key, 10)

    def lin(kw, kb, fan_in, fan_out):
        bound = 1.0 / jnp.sqrt(jnp.asarray(fan_in, jnp.float32))
        w = jax.random.uniform(kw, (fan_in, fan_out), jnp.float32, -bound, bound)
        b = jax.random.uniform(kb, (1, fan_out), jnp.float32, -bound, bound)
        return w, b

    w1, b1 = lin(ks[0], ks[1], obs_shape, hid_size)          # fnn1
    wg, bg = lin(ks[2], ks[3], hid_size, hid_size)            # GCNConv lin + bias
    w3, b3 = lin(ks[4], ks[5], 2 * hid_size, hid_size)        # fnn3 (on concat)
    wh, bh = lin(ks[6], ks[7], hid_size, n_actions)           # head
    wv, bv = lin(ks[8], ks[9], hid_size, 1)                   # value_head
    return {"w1": w1, "b1": b1, "wg": wg, "bg": bg,
            "w3x": w3[:hid_size], "w3h": w3[hid_size:], "b3": b3,
            "wh": wh, "bh": bh, "wv": wv, "bv": bv}


def pack_params(p, n_actions, compute_dtype=jnp.bfloat16, out_pad=OUT_PAD, align=ALIGN):
    """Pack the 13 small tensors into 4 resident slabs.  Weight slabs are pre-cast to the
    MXU operand dtype (default bf16); biases stay f32 (all elementwise math is f32).
    Segment row offsets are padded to multiples of `align` so in-kernel static slices are
    aligned, copy-free views."""
    f32 = jnp.float32
    obs_dim, hid = p["w1"].shape
    assert hid % align == 0, "hid_size must be a multiple of 16 for aligned slab slices"
    assert n_actions + 1 <= out_pad, "n_actions + 1 must fit in the 128-lane output slab"
    obs_dim_p = -(-obs_dim // align) * align
    w1p = jnp.zeros((obs_dim_p, hid), f32).at[:obs_dim].set(p["w1"])
    wbody = jnp.concatenate([w1p, p["wg"], p["w3x"], p["w3h"]], axis=0)
    bbody = jnp.concatenate([p["b1"], p["bg"], p["b3"]], axis=0)
    whead = jnp.zeros((hid, out_pad), f32)
    whead = whead.at[:, :n_actions].set(p["wh"])
    whead = whead.at[:, n_actions:n_actions + 1].set(p["wv"])
    bhead = jnp.zeros((1, out_pad), f32)
    bhead = bhead.at[:, :n_actions].set(p["bh"])
    bhead = bhead.at[:, n_actions:n_actions + 1].set(p["bv"])
    return {"wbody": wbody.astype(compute_dtype), "bbody": bbody.astype(f32),
            "whead": whead.astype(compute_dtype), "bhead": bhead.astype(f32)}


def gnn_reference(obs, adj_hat, has_edges, p):
    """Pure-JAX reference on the batched [B,N,*] layout."""
    x = jnp.tanh(obs @ p["w1"] + p["b1"])
    if has_edges:
        h = jnp.tanh(jnp.einsum("bij,bjk->bik", adj_hat, x @ p["wg"]) + p["bg"])
    else:
        h = x
    h2 = jnp.tanh(x @ p["w3x"] + h @ p["w3h"] + p["b3"])
    logits = h2 @ p["wh"] + p["bh"]
    logp = logits - jax.scipy.special.logsumexp(logits, axis=-1, keepdims=True)
    v = h2 @ p["wv"] + p["bv"]
    return logp, v


if __name__ == "__main__":
    N, OBS, HID, ACT = 8, 16, 32, 5
    B = 36   # not a multiple of BT=16 -> exercises batch padding (grid G = 3)

    key = jax.random.PRNGKey(0)
    k_obs, k_par = jax.random.split(key)
    obs = jax.random.normal(k_obs, (B, N, OBS), jnp.float32)
    params = init_params(k_par, OBS, HID, ACT)

    # per-graph adjacency: graph b is an undirected ring with stride (b % (N-1)) + 1
    adjs = []
    for b in range(B):
        shift = (b % (N - 1)) + 1
        src = jnp.concatenate([jnp.arange(N), (jnp.arange(N) + shift) % N])
        dst = jnp.concatenate([(jnp.arange(N) + shift) % N, jnp.arange(N)])
        adjs.append(build_gcn_adj((src, dst), N))
    adj_hat = jnp.stack(adjs, axis=0)

    ref_lp, ref_v = gnn_reference(obs, adj_hat, True, params)
    ref_lp0, ref_v0 = gnn_reference(obs, adj_hat, False, params)

    # --- default bf16 MXU-operand path (all generations), with edges ---
    packed_bf = pack_params(params, ACT)                         # bf16 slabs
    logp, v = gnn_forward(obs, adj_hat, packed_bf, has_edges=True, n_actions=ACT)
    jax.block_until_ready((logp, v))
    assert jnp.allclose(logp, ref_lp, atol=5e-2), "policy mismatch (edges, bf16)"
    assert jnp.allclose(v, ref_v, atol=5e-2), "value mismatch (edges, bf16)"

    # --- edgeless graphs (adjacency input dropped from the kernel entirely) ---
    logp0, v0 = gnn_forward(obs, None, packed_bf, has_edges=False, n_actions=ACT)
    jax.block_until_ready((logp0, v0))
    assert jnp.allclose(logp0, ref_lp0, atol=5e-2), "no-edge policy mismatch (bf16)"
    assert jnp.allclose(v0, ref_v0, atol=5e-2), "no-edge value mismatch (bf16)"

    # --- f32 MXU-operand path: tight check against the reference ---
    packed_f32 = pack_params(params, ACT, compute_dtype=jnp.float32)
    logp_f, v_f = gnn_forward(obs, adj_hat, packed_f32, has_edges=True, n_actions=ACT)
    jax.block_until_ready((logp_f, v_f))
    assert jnp.allclose(logp_f, ref_lp, atol=3e-5), "policy mismatch (edges, f32)"
    assert jnp.allclose(v_f, ref_v, atol=3e-5), "value mismatch (edges, f32)"

    # TODO(synk): if N ever scales to thousands of nodes, tile A_hat with a
    # (row-block, col-block) grid instead of one VMEM-resident block-diag slab
    # (v7x has only 64 MiB physical VMEM), and consider a bf16 output slab on v5e
    # to halve the padded 128-lane writeback.
    print("KERNEL_OK")
</pallas_src>

<mosaic_0001>
module attributes {stable_mosaic.version = 11 : i64} {
  func.func @kernel(%arg0: i32, %arg1: memref<128x16xbf16, #tpu.memory_space<vmem>>, %arg2: memref<1x128x128xbf16, #tpu.memory_space<vmem>>, %arg3: memref<112x32xbf16, #tpu.memory_space<vmem>>, %arg4: memref<3x32xf32, #tpu.memory_space<vmem>>, %arg5: memref<32x128xbf16, #tpu.memory_space<vmem>>, %arg6: memref<1x128xf32, #tpu.memory_space<vmem>>, %arg7: memref<128x128xf32, #tpu.memory_space<vmem>>) attributes {dimension_semantics = [#tpu.dimension_semantics<parallel>], iteration_bounds = array<i64: 3>, scalar_prefetch = 0 : i64, scratch_operands = 0 : i64, tpu.core_type = #tpu.core_type<tc>, window_params = [{transform_indices = @transform_0, window_bounds = array<i64: 128, 16>}, {transform_indices = @transform_1, window_bounds = array<i64: 1, 128, 128>}, {pipeline_mode = #tpu.pipeline_mode<synchronous>, transform_indices = @transform_2, window_bounds = array<i64: 112, 32>}, {pipeline_mode = #tpu.pipeline_mode<synchronous>, transform_indices = @transform_3, window_bounds = array<i64: 3, 32>}, {pipeline_mode = #tpu.pipeline_mode<synchronous>, transform_indices = @transform_4, window_bounds = array<i64: 32, 128>}, {pipeline_mode = #tpu.pipeline_mode<synchronous>, transform_indices = @transform_5, window_bounds = array<i64: 1, 128>}, {transform_indices = @transform_6, window_bounds = array<i64: 128, 128>}]} {
    %c0 = arith.constant 0 : index
    %c0_0 = arith.constant 0 : index
    %0 = vector.load %arg1[%c0, %c0_0] : memref<128x16xbf16, #tpu.memory_space<vmem>>, vector<128x16xbf16>
    %c0_1 = arith.constant 0 : index
    %c0_2 = arith.constant 0 : index
    %1 = vector.load %arg3[%c0_1, %c0_2] : memref<112x32xbf16, #tpu.memory_space<vmem>>, vector<16x32xbf16>
    %cst = arith.constant dense<0.000000e+00> : vector<128x32xf32>
    %2 = tpu.matmul %0, %1, %cst {dimension_numbers = #tpu.dot_dimension_numbers<[1], [0], [0], [1], [0, 0, 1, 1], [], []>} : vector<128x16xbf16>, vector<16x32xbf16>, vector<128x32xf32> -> vector<128x32xf32>
    %c0_3 = arith.constant 0 : index
    %c0_4 = arith.constant 0 : index
    %3 = vector.load %arg4[%c0_3, %c0_4] : memref<3x32xf32, #tpu.memory_space<vmem>>, vector<1x32xf32>
    %4 = vector.broadcast %3 : vector<1x32xf32> to vector<128x32xf32>
    %5 = arith.addf %2, %4 : vector<128x32xf32>
    %6 = math.tanh %5 : vector<128x32xf32>
    %7 = arith.truncf %6 : vector<128x32xf32> to vector<128x32xbf16>
    %c16 = arith.constant 16 : index
    %c0_5 = arith.constant 0 : index
    %8 = vector.load %arg3[%c16, %c0_5] : memref<112x32xbf16, #tpu.memory_space<vmem>>, vector<32x32xbf16>
    %cst_6 = arith.constant dense<0.000000e+00> : vector<128x32xf32>
    %9 = tpu.matmul %7, %8, %cst_6 {dimension_numbers = #tpu.dot_dimension_numbers<[1], [0], [0], [1], [0, 0, 1, 1], [], []>} : vector<128x32xbf16>, vector<32x32xbf16>, vector<128x32xf32> -> vector<128x32xf32>
    %10 = arith.truncf %9 : vector<128x32xf32> to vector<128x32xbf16>
    %c0_7 = arith.constant 0 : index
    %c0_8 = arith.constant 0 : index
    %c0_9 = arith.constant 0 : index
    %11 = vector.load %arg2[%c0_7, %c0_8, %c0_9] : memref<1x128x128xbf16, #tpu.memory_space<vmem>>, vector<1x128x128xbf16>
    %12 = vector.shape_cast %11 : vector<1x128x128xbf16> to vector<128x128xbf16>
    %cst_10 = arith.constant dense<0.000000e+00> : vector<128x32xf32>
    %13 = tpu.matmul %12, %10, %cst_10 {dimension_numbers = #tpu.dot_dimension_numbers<[1], [0], [0], [1], [0, 0, 1, 1], [], []>} : vector<128x128xbf16>, vector<128x32xbf16>, vector<128x32xf32> -> vector<128x32xf32>
    %c1 = arith.constant 1 : index
    %c0_11 = arith.constant 0 : index
    %14 = vector.load %arg4[%c1, %c0_11] : memref<3x32xf32, #tpu.memory_space<vmem>>, vector<1x32xf32>
    %15 = vector.broadcast %14 : vector<1x32xf32> to vector<128x32xf32>
    %16 = arith.addf %13, %15 : vector<128x32xf32>
    %17 = math.tanh %16 : vector<128x32xf32>
    %18 = arith.truncf %17 : vector<128x32xf32> to vector<128x32xbf16>
    %c48 = arith.constant 48 : index
    %c0_12 = arith.constant 0 : index
    %19 = vector.load %arg3[%c48, %c0_12] : memref<112x32xbf16, #tpu.memory_space<vmem>>, vector<32x32xbf16>
    %c80 = arith.constant 80 : index
    %c0_13 = arith.constant 0 : index
    %20 = vector.load %arg3[%c80, %c0_13] : memref<112x32xbf16, #tpu.memory_space<vmem>>, vector<32x32xbf16>
    %cst_14 = arith.constant dense<0.000000e+00> : vector<128x32xf32>
    %21 = tpu.matmul %7, %19, %cst_14 {dimension_numbers = #tpu.dot_dimension_numbers<[1], [0], [0], [1], [0, 0, 1, 1], [], []>} : vector<128x32xbf16>, vector<32x32xbf16>, vector<128x32xf32> -> vector<128x32xf32>
    %cst_15 = arith.constant dense<0.000000e+00> : vector<128x32xf32>
    %22 = tpu.matmul %18, %20, %cst_15 {dimension_numbers = #tpu.dot_dimension_numbers<[1], [0], [0], [1], [0, 0, 1, 1], [], []>} : vector<128x32xbf16>, vector<32x32xbf16>, vector<128x32xf32> -> vector<128x32xf32>
    %23 = arith.addf %21, %22 : vector<128x32xf32>
    %c2 = arith.constant 2 : index
    %c0_16 = arith.constant 0 : index
    %24 = vector.load %arg4[%c2, %c0_16] : memref<3x32xf32, #tpu.memory_space<vmem>>, vector<1x32xf32>
    %25 = vector.broadcast %24 : vector<1x32xf32> to vector<128x32xf32>
    %26 = arith.addf %23, %25 : vector<128x32xf32>
    %27 = math.tanh %26 : vector<128x32xf32>
    %28 = arith.truncf %27 : vector<128x32xf32> to vector<128x32xbf16>
    %c0_17 = arith.constant 0 : index
    %c0_18 = arith.constant 0 : index
    %29 = vector.load %arg5[%c0_17, %c0_18] : memref<32x128xbf16, #tpu.memory_space<vmem>>, vector<32x128xbf16>
    %cst_19 = arith.constant dense<0.000000e+00> : vector<128x128xf32>
    %30 = tpu.matmul %28, %29, %cst_19 {dimension_numbers = #tpu.dot_dimension_numbers<[1], [0], [0], [1], [0, 0, 1, 1], [], []>} : vector<128x32xbf16>, vector<32x128xbf16>, vector<128x128xf32> -> vector<128x128xf32>
    %c0_20 = arith.constant 0 : index
    %c0_21 = arith.constant 0 : index
    %31 = vector.load %arg6[%c0_20, %c0_21] : memref<1x128xf32, #tpu.memory_space<vmem>>, vector<1x128xf32>
    %32 = vector.broadcast %31 : vector<1x128xf32> to vector<128x128xf32>
    %33 = arith.addf %30, %32 : vector<128x128xf32>
    %34 = tpu.iota {dimensions = array<i32: 1>} : vector<128x128xi32>
    %c5_i32 = arith.constant 5 : i32
    %35 = vector.broadcast %c5_i32 : i32 to vector<128x128xi32>
    %36 = arith.cmpi slt, %34, %35 : vector<128x128xi32>
    %cst_22 = arith.constant -1.000000e+30 : f32
    %37 = vector.broadcast %cst_22 : f32 to vector<128x128xf32>
    %38 = arith.select %36, %33, %37 : vector<128x128xi1>, vector<128x128xf32>
    %cst_23 = arith.constant dense<0xFF800000> : vector<128xf32>
    %39 = vector.multi_reduction <maximumf>, %38, %cst_23 [1] : vector<128x128xf32> to vector<128xf32>
    %40 = vector.shape_cast %39 : vector<128xf32> to vector<128x1xf32>
    %41 = vector.broadcast %40 : vector<128x1xf32> to vector<128x128xf32>
    %42 = arith.subf %33, %41 : vector<128x128xf32>
    %cst_24 = arith.constant 0.000000e+00 : f32
    %43 = vector.broadcast %cst_24 : f32 to vector<128x128xf32>
    %44 = arith.minimumf %42, %43 : vector<128x128xf32>
    %45 = math.exp %44 : vector<128x128xf32>
    %cst_25 = arith.constant 0.000000e+00 : f32
    %46 = vector.broadcast %cst_25 : f32 to vector<128x128xf32>
    %47 = arith.select %36, %45, %46 : vector<128x128xi1>, vector<128x128xf32>
    %cst_26 = arith.constant dense<0.000000e+00> : vector<128xf32>
    %48 = vector.multi_reduction <add>, %47, %cst_26 [1] : vector<128x128xf32> to vector<128xf32>
    %49 = vector.shape_cast %48 : vector<128xf32> to vector<128x1xf32>
    %50 = math.log %49 : vector<128x1xf32>
    %51 = vector.broadcast %50 : vector<128x1xf32> to vector<128x128xf32>
    %52 = arith.subf %42, %51 : vector<128x128xf32>
    %c5_i32_27 = arith.constant 5 : i32
    %53 = vector.broadcast %c5_i32_27 : i32 to vector<128x128xi32>
    %54 = arith.cmpi eq, %34, %53 : vector<128x128xi32>
    %55 = arith.select %54, %33, %52 : vector<128x128xi1>, vector<128x128xf32>
    %c0_28 = arith.constant 0 : index
    %c0_29 = arith.constant 0 : index
    %56 = vector.load %arg7[%c0_28, %c0_29] : memref<128x128xf32, #tpu.memory_space<vmem>>, vector<128x128xf32>
    tpu.vector_store %arg7[%c0_28, %c0_29], %55 {strides = array<i32>} : memref<128x128xf32, #tpu.memory_space<vmem>>, vector<128x128xf32>,
    return
  }
  func.func @transform_0(%arg0: i32) -> (i32, i32) {
    %c0_i32 = arith.constant 0 : i32
    %c0_i32_0 = arith.constant 0 : i32
    return %arg0, %c0_i32 : i32, i32
  }
  func.func @transform_1(%arg0: i32) -> (i32, i32, i32) {
    %c0_i32 = arith.constant 0 : i32
    %c0_i32_0 = arith.constant 0 : i32
    %c0_i32_1 = arith.constant 0 : i32
    return %arg0, %c0_i32, %c0_i32_0 : i32, i32, i32
  }
  func.func @transform_2(%arg0: i32) -> (i32, i32) {
    %c0_i32 = arith.constant 0 : i32
    %c0_i32_0 = arith.constant 0 : i32
    %c0_i32_1 = arith.constant 0 : i32
    return %c0_i32, %c0_i32_0 : i32, i32
  }
  func.func @transform_3(%arg0: i32) -> (i32, i32) {
    %c0_i32 = arith.constant 0 : i32
    %c0_i32_0 = arith.constant 0 : i32
    %c0_i32_1 = arith.constant 0 : i32
    return %c0_i32, %c0_i32_0 : i32, i32
  }
  func.func @transform_4(%arg0: i32) -> (i32, i32) {
    %c0_i32 = arith.constant 0 : i32
    %c0_i32_0 = arith.constant 0 : i32
    %c0_i32_1 = arith.constant 0 : i32
    return %c0_i32, %c0_i32_0 : i32, i32
  }
  func.func @transform_5(%arg0: i32) -> (i32, i32) {
    %c0_i32 = arith.constant 0 : i32
    %c0_i32_0 = arith.constant 0 : i32
    %c0_i32_1 = arith.constant 0 : i32
    return %c0_i32, %c0_i32_0 : i32, i32
  }
  func.func @transform_6(%arg0: i32) -> (i32, i32) {
    %c0_i32 = arith.constant 0 : i32
    %c0_i32_0 = arith.constant 0 : i32
    return %arg0, %c0_i32 : i32, i32
  }
}

</mosaic_0001>

<bundles_post_ra>
// kernel: gnn_forward.1
= control target key start
LH: loop header
LB: loop body
LE: loop exit
PB: predicated region body
PF: predicated region fallthrough
CT: control target
= control target key end

     0   :  { %s1677_s21 = smov 0   ;;  %s2119_s0 = inlined_call_operand.vmem [shape: bf16[384,16], index: 0, kind: input, shape index: {}]   ;;  %s2120_s1 = inlined_call_operand.vmem [shape: bf16[3,128,128], index: 1, kind: input, shape index: {}]   ;;  %s2121_s2 = inlined_call_operand.vmem [shape: bf16[112,32], index: 2, kind: input, shape index: {}]   ;;  %s2122_s3 = inlined_call_operand.vmem [shape: f32[3,32], index: 3, kind: input, shape index: {}]   ;;  %s2123_s4 = inlined_call_operand.vmem [shape: bf16[32,128], index: 4, kind: input, shape index: {}]   ;;  %s2124_s5 = inlined_call_operand.vmem [shape: f32[1,128], index: 5, kind: input, shape index: {}]   ;;  %s2125_s6 = inlined_call_operand.vmem [shape: f32[384,128], index: 6, kind: output, shape index: {}]  }
   0x1 LB: > { %s1683_s22 = sadd.s32 4294967295, %s1640_s21   ;;  %p1282_p0 = scmp.ge.s32.totalorder %s1640_s21, 1  ;;  %s1640_s21 = sphi %s1677_s21, %s16_s21  }
   0x2   : > { %p223_p1 = scmp.lt.s32.totalorder %s1640_s21, 4 }
   0x4   : > { %p224_p2 = pnand %p1282_p0, %p223_p1 }
   0x5   : > { %s1283_s25 = sshll.u32 (!%p224_p2), %s1683_s22, 4  ;;  %p264_p4 = scmp.lt.s32.totalorder (!%p224_p2), %s1683_s22, 2 }
   0x6   : > { %227 = sbr.rel (%p224_p2) target bundleno = 1197 (0x4ad), region = 44  ;;  %p259_p3 = scmp.lt.s32.totalorder (!%p224_p2), %s1283_s25, 47 }
   0xb   : > { %v1440_v0 = vld [vmem:[%s2121_s2] sm:$0xff]  ;;  %s2127_s25 = smov (!%p259_p3, %s1283_s25), 47  ;;  %vm342_vm0 = vcmask 130048   ;;  %v1442_v9 = vld [vmem:[%s2121_s2 + $0x10] sm:$0xff]  ;;  %v1441_v11 = vld [vmem:[%s2121_s2 + $0x8] sm:$0xff]  ;;  %vm456_vm1 = vcmask 261120  }
   0xc   : > { %374 = vmatpush.bf16.msra.mxu0 %v1440_v0  ;;  %1457 = vmatpush.bf16.msra.mxu2 %v1440_v0  ;;  %s1284_s26 = sshll.u32 %s2127_s25, 2  ;;  %v1452_v10 = vld [vmem:[%s2121_s2 + $0x20] sm:$0xff]  ;;  %v1451_v12 = vld [vmem:[%s2121_s2 + $0x18] sm:$0xff]  ;;  %s2129_s22 = smov (!%p264_p4, %s1683_s22), 2 }
   0xd   : > { %s262_s29 = scalar_lea.vmem %s2119_s0, %s1284_s26  ;;  %487 = vmatpush.bf16.msra.mxu1 %v1442_v9  ;;  %1458 = vmatpush.bf16.msra.mxu3 %v1442_v9  ;;  %v1720_v14 = vld [vmem:[%s2122_s3] ss:$0 sm:$0xff]  ;;  %s1431_s16 = sshll.u32 %s2129_s22, 6 }
   0xe   : > { %v1432_v1 = vld [vmem:[%s262_s29] sm:$0xff]  ;;  %v1437_v2 = vld [vmem:[%s262_s29 + $0x28] sm:$0xff]  ;;  %v1438_v4 = vld [vmem:[%s262_s29 + $0x30] sm:$0xff]  ;;  %s268_s19 = scalar_lea.vmem %s2120_s1, %s1431_s16  ;;  %s1288_s12 = sshll.u32 %s2127_s25, 3 }
   0xf   : > { %1325 = vmatmul.msk.bf16.vlgmr.msra.gmra.mxu0 %vm342_vm0, %v1432_v1  ;;  %1330 = vmatmul.msk.bf16.vlgmr.msra.gmra.mxu2 %vm342_vm0, %v1437_v2  ;;  %v1433_v3 = vld [vmem:[%s262_s29 + $0x8] sm:$0xff]  ;;  %v1434_v5 = vld [vmem:[%s262_s29 + $0x10] sm:$0xff]  ;;  %v1439_v6 = vld [vmem:[%s262_s29 + $0x38] sm:$0xff]  ;;  %s2032_s15 = scalar_lea.vmem %s2125_s6, %s1288_s12 }
  0x10   : > { %v1435_v7 = vld [vmem:[%s262_s29 + $0x18] sm:$0xff]  ;;  %v1436_v8 = vld [vmem:[%s262_s29 + $0x20] sm:$0xff]  ;;  %788 = vmatpush.bf16.msrb.mxu0 %v1452_v10 }
  0x11   : > { %488 = vmatpush.bf16.msra.mxu1 %v1441_v11  ;;  %1459 = vmatpush.bf16.msra.mxu3 %v1441_v11 }
  0x14   : > { %789 = vmatpush.bf16.msrb.mxu0 %v1451_v12 }
  0x1f   : > { %1326 = vmatmul.msk.bf16.gmra.mxu0 %vm342_vm0, %v1433_v3  ;;  %1331 = vmatmul.msk.bf16.gmra.mxu2 %vm342_vm0, %v1438_v4 }
  0x2f   : > { %1327 = vmatmul.msk.bf16.gmra.mxu0 %vm342_vm0, %v1434_v5  ;;  %1332 = vmatmul.msk.bf16.gmra.mxu2 %vm342_vm0, %v1439_v6 }
  0x3f   : > { %1328 = vmatmul.msk.bf16.gmra.mxu0 %vm342_vm0, %v1435_v7 }
  0x4f   : > { %1329 = vmatmul.msk.bf16.gmra.mxu0 %vm342_vm0, %v1436_v8 }
  0x8c   : > { %v376_v13 = vpop.f32.mrf.mxu0 }
  0x8d   : > { %v377_v15 = vadd.f32 %v1720_v14, %v376_v13 }
  0x8f   : > { %1474 = vtanh.f32 %v377_v15 }
  0x92   : > { %v401_v16 = vpop.f32.mrf.mxu2 }
  0x93   : > { %v402_v19 = vadd.f32 %v1720_v14, %v401_v16 }
  0x94   : > { %v378_v17 = vpop.f32.mrf.mxu0 }
  0x95   : > { %v379_v18 = vadd.f32 %v1720_v14, %v378_v17  ;;  %v1475_v22 = vpop.eup %1474 }
  0x97   : > { %1476 = vtanh.f32 %v379_v18 }
  0x98   : > { %1478 = vtanh.f32 %v402_v19 }
  0x9a   : > { %v403_v20 = vpop.f32.mrf.mxu2 }
  0x9b   : > { %v404_v21 = vadd.f32 %v1720_v14, %v403_v20 }
  0x9c   : > { %v381_v23 = vpop.f32.mrf.mxu0 }
  0x9d   : > { %v1477_v24 = vpop.eup %1476  ;;  %1480 = vtanh.f32 %v404_v21  ;;  %v382_v27 = vadd.f32 %v1720_v14, %v381_v23 }
  0x9e   : > { %v432_v25 = vpack.c.bf16 %v1477_v24, %v1475_v22  ;;  %v1479_v26 = vpop.eup %1478 }
  0x9f   : > { %1482 = vtanh.f32 %v382_v27 }
  0xa0   : > { %1341 = vmatmul.msk.bf16.vlgmr.msra.gmra.mxu1 %vm456_vm1, %v432_v25  ;;  %1405 = vmatmul.msk.bf16.vlgmr.msrb.gmra.mxu0 %vm456_vm1, %v432_v25 }
  0xa2   : > { %v406_v28 = vpop.f32.mrf.mxu2 }
  0xa3   : > { %v1481_v29 = vpop.eup %1480  ;;  %v407_v33 = vadd.f32 %v1720_v14, %v406_v28 }
  0xa4   : > { %v383_v30 = vpop.f32.mrf.mxu0  ;;  %v437_v31 = vpack.c.bf16 %v1481_v29, %v1479_v26 }
  0xa5   : > { %v384_v32 = vadd.f32 %v1720_v14, %v383_v30  ;;  %v1483_v36 = vpop.eup %1482  ;;  %v1443_v30 = vld [vmem:[%s268_s19] sm:$0xff] }
  0xa6   : > { %1346 = vmatmul.msk.bf16.vlgmr.msra.gmra.mxu3 %vm456_vm1, %v437_v31 }
  0xa7   : > { %1484 = vtanh.f32 %v384_v32  ;;  %v1445_v32 = vld [vmem:[%s268_s19 + $0x10] sm:$0xff] }
  0xa8   : > { %1486 = vtanh.f32 %v407_v33  ;;  %v1446_v33 = vld [vmem:[%s268_s19 + $0x18] sm:$0xff] }
  0xaa   : > { %v408_v34 = vpop.f32.mrf.mxu2 }
  0xab   : > { %v409_v35 = vadd.f32 %v1720_v14, %v408_v34  ;;  %v1447_v34 = vld [vmem:[%s268_s19 + $0x20] sm:$0xff] }
  0xac   : > { %v386_v37 = vpop.f32.mrf.mxu0 }
  0xad   : > { %v1485_v38 = vpop.eup %1484  ;;  %1488 = vtanh.f32 %v409_v35  ;;  %v387_v41 = vadd.f32 %v1720_v14, %v386_v37  ;;  %v1448_v35 = vld [vmem:[%s268_s19 + $0x28] sm:$0xff]  ;;  %v1449_v37 = vld [vmem:[%s268_s19 + $0x30] sm:$0xff] }
  0xae   : > { %v433_v39 = vpack.c.bf16 %v1485_v38, %v1483_v36  ;;  %v1487_v40 = vpop.eup %1486  ;;  %v1454_v36 = vld [vmem:[%s2121_s2 + $0x30] sm:$0xff]  ;;  %v1453_v38 = vld [vmem:[%s2121_s2 + $0x28] sm:$0xff] }
  0xaf   : > { %1490 = vtanh.f32 %v387_v41  ;;  %727 = vmatpush.bf16.msrb.mxu3 %v1454_v36  ;;  %v1768_v41 = vld [vmem:[%s2122_s3 + $0x1] ss:$0 sm:$0xff] }
  0xb0   : > { %1342 = vmatmul.msk.bf16.gmra.mxu1 %vm456_vm1, %v433_v39  ;;  %1406 = vmatmul.msk.bf16.gmra.mxu0 %vm456_vm1, %v433_v39  ;;  %v1450_v39 = vld [vmem:[%s268_s19 + $0x38] sm:$0xff]  ;;  %v1455_v36 = vld [vmem:[%s2123_s4] sm:$0xff] }
  0xb2   : > { %v411_v42 = vpop.f32.mrf.mxu2 }
  0xb3   : > { %v1489_v43 = vpop.eup %1488  ;;  %v412_v47 = vadd.f32 %v1720_v14, %v411_v42  ;;  %728 = vmatpush.bf16.msrb.mxu3 %v1453_v38 }
  0xb4   : > { %v388_v44 = vpop.f32.mrf.mxu0  ;;  %v438_v45 = vpack.c.bf16 %v1489_v43, %v1487_v40 }
  0xb5   : > { %v389_v46 = vadd.f32 %v1720_v14, %v388_v44  ;;  %v1491_v50 = vpop.eup %1490 }
  0xb6   : > { %1347 = vmatmul.msk.bf16.gmra.mxu3 %vm456_vm1, %v438_v45 }
  0xb7   : > { %1492 = vtanh.f32 %v389_v46 }
  0xb8   : > { %1494 = vtanh.f32 %v412_v47 }
  0xba   : > { %v413_v48 = vpop.f32.mrf.mxu2 }
  0xbb   : > { %v414_v49 = vadd.f32 %v1720_v14, %v413_v48 }
  0xbc   : > { %v391_v51 = vpop.f32.mrf.mxu0 }
  0xbd   : > { %v1493_v52 = vpop.eup %1492  ;;  %1496 = vtanh.f32 %v414_v49  ;;  %v392_v55 = vadd.f32 %v1720_v14, %v391_v51 }
  0xbe   : > { %v434_v53 = vpack.c.bf16 %v1493_v52, %v1491_v50  ;;  %v1495_v54 = vpop.eup %1494 }
  0xbf   : > { %1498 = vtanh.f32 %v392_v55 }
  0xc0   : > { %1343 = vmatmul.msk.bf16.gmra.mxu1 %vm456_vm1, %v434_v53  ;;  %1407 = vmatmul.msk.bf16.gmra.mxu0 %vm456_vm1, %v434_v53 }
  0xc3   : > { %v1497_v56 = vpop.eup %1496 }
  0xc4   : > { %v393_v57 = vpop.f32.mrf.mxu0  ;;  %v439_v58 = vpack.c.bf16 %v1497_v56, %v1495_v54 }
  0xc5   : > { %v394_v59 = vadd.f32 %v1720_v14, %v393_v57  ;;  %v1499_v60 = vpop.eup %1498 }
  0xc6   : > { %1348 = vmatmul.msk.bf16.gmra.mxu3 %vm456_vm1, %v439_v58 }
  0xc7   : > { %1500 = vtanh.f32 %v394_v59 }
  0xcc   : > { %v396_v61 = vpop.f32.mrf.mxu0 }
  0xcd   : > { %v1501_v62 = vpop.eup %1500  ;;  %v397_v0 = vadd.f32 %v1720_v14, %v396_v61 }
  0xce   : > { %v435_v63 = vpack.c.bf16 %v1501_v62, %v1499_v60 }
  0xcf   : > { %1502 = vtanh.f32 %v397_v0 }
  0xd0   : > { %1344 = vmatmul.msk.bf16.gmra.mxu1 %vm456_vm1, %v435_v63  ;;  %1408 = vmatmul.msk.bf16.gmra.mxu0 %vm456_vm1, %v435_v63 }
  0xd4   : > { %v398_v1 = vpop.f32.mrf.mxu0 }
  0xd5   : > { %v399_v2 = vadd.f32 %v1720_v14, %v398_v1  ;;  %v1503_v3 = vpop.eup %1502 }
  0xd7   : > { %1504 = vtanh.f32 %v399_v2 }
  0xdd   : > { %v1505_v4 = vpop.eup %1504 }
  0xde   : > { %v436_v5 = vpack.c.bf16 %v1505_v4, %v1503_v3 }
  0xe0   : > { %1345 = vmatmul.msk.bf16.gmra.mxu1 %vm456_vm1, %v436_v5  ;;  %1409 = vmatmul.msk.bf16.gmra.mxu0 %vm456_vm1, %v436_v5 }
  0xf0   : > { %1410 = vmatmul.msk.bf16.gmra.mxu0 %vm456_vm1, %v437_v31  ;;  %v1444_v31 = vld [vmem:[%s268_s19 + $0x8] sm:$0xff] }
 0x100   : > { %1411 = vmatmul.msk.bf16.gmra.mxu0 %vm456_vm1, %v438_v45 }
 0x110   : > { %1412 = vmatmul.msk.bf16.gmra.mxu0 %vm456_vm1, %v439_v58 }
 0x11d   : > { %v490_v6 = vpop.f32.mrf.mxu1 }
 0x125   : > { %v492_v7 = vpop.f32.mrf.mxu1 }
 0x126   : > { %v530_v8 = vpack.c.bf16 %v492_v7, %v490_v6 }
 0x129   : > { %v515_v9 = vpop.f32.mrf.mxu3 }
 0x12d   : > { %v495_v10 = vpop.f32.mrf.mxu1 }
 0x131   : > { %v517_v11 = vpop.f32.mrf.mxu3 }
 0x132   : > { %v535_v23 = vpack.c.bf16 %v517_v11, %v515_v9 }
 0x135   : > { %v497_v12 = vpop.f32.mrf.mxu1 }
 0x136   : > { %v531_v29 = vpack.c.bf16 %v497_v12, %v495_v10 }
 0x139   : > { %v520_v13 = vpop.f32.mrf.mxu3 }
 0x13d   : > { %v500_v14 = vpop.f32.mrf.mxu1 }
 0x141   : > { %v522_v15 = vpop.f32.mrf.mxu3 }
 0x142   : > { %v536_v22 = vpack.c.bf16 %v522_v15, %v520_v13 }
 0x145   : > { %v502_v16 = vpop.f32.mrf.mxu1 }
 0x146   : > { %v532_v28 = vpack.c.bf16 %v502_v16, %v500_v14  ;;  %v1456_v16 = vld [vmem:[%s2123_s4 + $0x8] sm:$0xff] }
 0x147   : > { %923 = vmatpush.bf16.msrb.mxu1 %v1456_v16 }
 0x149   : > { %v525_v17 = vpop.f32.mrf.mxu3 }
 0x14b   : > { %924 = vmatpush.bf16.msrb.mxu1 %v1455_v36 }
 0x14d   : > { %v505_v18 = vpop.f32.mrf.mxu1 }
 0x151   : > { %v527_v19 = vpop.f32.mrf.mxu3 }
 0x152   : > { %v537_v20 = vpack.c.bf16 %v527_v19, %v525_v17 }
 0x154   : > { %604 = vmatpush.bf16.msrb.mxu2 %v537_v20 }
 0x155   : > { %v507_v21 = vpop.f32.mrf.mxu1 }
 0x156   : > { %v533_v27 = vpack.c.bf16 %v507_v21, %v505_v18 }
 0x158   : > { %605 = vmatpush.bf16.msrb.mxu2 %v536_v22 }
 0x15c   : > { %606 = vmatpush.bf16.msrb.mxu2 %v535_v23 }
 0x15d   : > { %v510_v24 = vpop.f32.mrf.mxu1 }
 0x165   : > { %v512_v25 = vpop.f32.mrf.mxu1 }
 0x166   : > { %v534_v26 = vpack.c.bf16 %v512_v25, %v510_v24 }
 0x168   : > { %607 = vmatpush.bf16.msrb.mxu2 %v534_v26 }
 0x16c   : > { %608 = vmatpush.bf16.msrb.mxu2 %v533_v27 }
 0x170   : > { %609 = vmatpush.bf16.msrb.mxu2 %v532_v28 }
 0x174   : > { %610 = vmatpush.bf16.msrb.mxu2 %v531_v29 }
 0x178   : > { %611 = vmatpush.bf16.msrb.mxu2 %v530_v8 }
 0x17b   : > { %612 = vmatmul.bf16.vlgmr.msrb.gmra.mxu2 %v1443_v30  ;;  %v791_v30 = vpop.f32.mrf.mxu0 }
 0x17c   : > { %1460 = vmatpush.bf16.msra.mxu2 %v1456_v16 }
 0x180   : > { %1461 = vmatpush.bf16.msra.mxu2 %v1455_v36 }
 0x18b   : > { %617 = vmatmul.bf16.gmra.mxu2 %v1444_v31 }
 0x19b   : > { %622 = vmatmul.bf16.gmra.mxu2 %v1445_v32 }
 0x1ab   : > { %627 = vmatmul.bf16.gmra.mxu2 %v1446_v33 }
 0x1bb   : > { %632 = vmatmul.bf16.gmra.mxu2 %v1447_v34 }
 0x1cb   : > { %637 = vmatmul.bf16.gmra.mxu2 %v1448_v35  ;;  %v793_v35 = vpop.f32.mrf.mxu0 }
 0x1db   : > { %642 = vmatmul.bf16.gmra.mxu2 %v1449_v37  ;;  %v796_v37 = vpop.f32.mrf.mxu0 }
 0x1e3   : > { %v798_v38 = vpop.f32.mrf.mxu0 }
 0x1eb   : > { %647 = vmatmul.bf16.gmra.mxu2 %v1450_v39 }
 0x1fe   : > { %v613_v40 = vpop.f32.mrf.mxu2 }
 0x1ff   : > { %v614_v42 = vadd.f32 %v1768_v41, %v613_v40 }
 0x201   : > { %1506 = vtanh.f32 %v614_v42 }
 0x206   : > { %v615_v43 = vpop.f32.mrf.mxu2 }
 0x207   : > { %v616_v44 = vadd.f32 %v1768_v41, %v615_v43  ;;  %v1507_v45 = vpop.eup %1506 }
 0x209   : > { %1508 = vtanh.f32 %v616_v44 }
 0x20e   : > { %v618_v46 = vpop.f32.mrf.mxu2 }
 0x20f   : > { %v1509_v47 = vpop.eup %1508  ;;  %v619_v49 = vadd.f32 %v1768_v41, %v618_v46 }
 0x210   : > { %v669_v48 = vpack.c.bf16 %v1509_v47, %v1507_v45  ;;  %v801_v45 = vpop.f32.mrf.mxu0 }
 0x211   : > { %1510 = vtanh.f32 %v619_v49 }
 0x212   : > { %1389 = vmatmul.msk.bf16.vlgmr.msrb.gmra.mxu3 %vm456_vm1, %v669_v48 }
 0x216   : > { %v620_v50 = vpop.f32.mrf.mxu2 }
 0x217   : > { %v621_v51 = vadd.f32 %v1768_v41, %v620_v50  ;;  %v1511_v52 = vpop.eup %1510 }
 0x218   : > { %v803_v50 = vpop.f32.mrf.mxu0 }
 0x219   : > { %1512 = vtanh.f32 %v621_v51 }
 0x21e   : > { %v623_v53 = vpop.f32.mrf.mxu2 }
 0x21f   : > { %v1513_v54 = vpop.eup %1512  ;;  %v624_v56 = vadd.f32 %v1768_v41, %v623_v53 }
 0x220   : > { %v670_v55 = vpack.c.bf16 %v1513_v54, %v1511_v52 }
 0x221   : > { %1514 = vtanh.f32 %v624_v56 }
 0x222   : > { %1390 = vmatmul.msk.bf16.gmra.mxu3 %vm456_vm1, %v670_v55 }
 0x226   : > { %v625_v57 = vpop.f32.mrf.mxu2 }
 0x227   : > { %v626_v58 = vadd.f32 %v1768_v41, %v625_v57  ;;  %v1515_v59 = vpop.eup %1514  ;;  %v806_v57 = vpop.f32.mrf.mxu0 }
 0x229   : > { %1516 = vtanh.f32 %v626_v58 }
 0x22e   : > { %v628_v60 = vpop.f32.mrf.mxu2 }
 0x22f   : > { %v1517_v61 = vpop.eup %1516  ;;  %v629_v63 = vadd.f32 %v1768_v41, %v628_v60 }
 0x230   : > { %v671_v62 = vpack.c.bf16 %v1517_v61, %v1515_v59 }
 0x231   : > { %1518 = vtanh.f32 %v629_v63  ;;  %v808_v63 = vpop.f32.mrf.mxu0 }
 0x232   : > { %1391 = vmatmul.msk.bf16.gmra.mxu3 %vm456_vm1, %v671_v62 }
 0x236   : > { %v630_v0 = vpop.f32.mrf.mxu2 }
 0x237   : > { %v631_v1 = vadd.f32 %v1768_v41, %v630_v0  ;;  %v1519_v2 = vpop.eup %1518 }
 0x239   : > { %1520 = vtanh.f32 %v631_v1 }
 0x23e   : > { %v633_v3 = vpop.f32.mrf.mxu2 }
 0x23f   : > { %v1521_v4 = vpop.eup %1520  ;;  %v634_v6 = vadd.f32 %v1768_v41, %v633_v3 }
 0x240   : > { %v672_v5 = vpack.c.bf16 %v1521_v4, %v1519_v2 }
 0x241   : > { %1522 = vtanh.f32 %v634_v6  ;;  %v811_v6 = vpop.f32.mrf.mxu0 }
 0x242   : > { %1392 = vmatmul.msk.bf16.gmra.mxu3 %vm456_vm1, %v672_v5 }
 0x246   : > { %v635_v7 = vpop.f32.mrf.mxu2 }
 0x247   : > { %v636_v8 = vadd.f32 %v1768_v41, %v635_v7  ;;  %v1523_v9 = vpop.eup %1522 }
 0x249   : > { %1524 = vtanh.f32 %v636_v8 }
 0x24e   : > { %v638_v10 = vpop.f32.mrf.mxu2 }
 0x24f   : > { %v1525_v11 = vpop.eup %1524  ;;  %v639_v13 = vadd.f32 %v1768_v41, %v638_v10 }
 0x250   : > { %v673_v12 = vpack.c.bf16 %v1525_v11, %v1523_v9 }
 0x251   : > { %1526 = vtanh.f32 %v639_v13 }
 0x252   : > { %1393 = vmatmul.msk.bf16.gmra.mxu3 %vm456_vm1, %v673_v12 }
 0x256   : > { %v640_v14 = vpop.f32.mrf.mxu2 }
 0x257   : > { %v641_v15 = vadd.f32 %v1768_v41, %v640_v14  ;;  %v1527_v17 = vpop.eup %1526  ;;  %v813_v14 = vpop.f32.mrf.mxu0 }
 0x259   : > { %1528 = vtanh.f32 %v641_v15 }
 0x25e   : > { %v643_v18 = vpop.f32.mrf.mxu2 }
 0x25f   : > { %v1529_v19 = vpop.eup %1528  ;;  %v644_v21 = vadd.f32 %v1768_v41, %v643_v18 }
 0x260   : > { %v674_v20 = vpack.c.bf16 %v1529_v19, %v1527_v17 }
 0x261   : > { %1530 = vtanh.f32 %v644_v21 }
 0x262   : > { %1394 = vmatmul.msk.bf16.gmra.mxu3 %vm456_vm1, %v674_v20  ;;  %v816_v20 = vpop.f32.mrf.mxu0 }
 0x266   : > { %v645_v22 = vpop.f32.mrf.mxu2 }
 0x267   : > { %v646_v23 = vadd.f32 %v1768_v41, %v645_v22  ;;  %v1531_v24 = vpop.eup %1530 }
 0x269   : > { %1532 = vtanh.f32 %v646_v23 }
 0x26e   : > { %v648_v25 = vpop.f32.mrf.mxu2 }
 0x26f   : > { %v1533_v26 = vpop.eup %1532  ;;  %v649_v28 = vadd.f32 %v1768_v41, %v648_v25  ;;  %v818_v25 = vpop.f32.mrf.mxu0 }
 0x270   : > { %v675_v27 = vpack.c.bf16 %v1533_v26, %v1531_v24 }
 0x271   : > { %1534 = vtanh.f32 %v649_v28 }
 0x272   : > { %1395 = vmatmul.msk.bf16.gmra.mxu3 %vm456_vm1, %v675_v27 }
 0x276   : > { %v650_v29 = vpop.f32.mrf.mxu2 }
 0x277   : > { %v651_v31 = vadd.f32 %v1768_v41, %v650_v29  ;;  %v1535_v32 = vpop.eup %1534  ;;  %v1803_v41 = vld [vmem:[%s2122_s3 + $0x2] ss:$0 sm:$0xff] }
 0x279   : > { %1536 = vtanh.f32 %v651_v31 }
 0x27f   : > { %v1537_v33 = vpop.eup %1536 }
 0x280   : > { %v676_v34 = vpack.c.bf16 %v1537_v33, %v1535_v32 }
 0x282   : > { %1396 = vmatmul.msk.bf16.gmra.mxu3 %vm456_vm1, %v676_v34  ;;  %v821_v34 = vpop.f32.mrf.mxu0 }
 0x295   : > { %v730_v39 = vpop.f32.mrf.mxu3 }
 0x296   : > { %v792_v40 = vadd.f32 %v791_v30, %v730_v39  ;;  %v823_v39 = vpop.f32.mrf.mxu0 }
 0x298   : > { %v833_v42 = vadd.f32 %v1803_v41, %v792_v40 }
 0x29a   : > { %1538 = vtanh.f32 %v833_v42 }
 0x29d   : > { %v732_v43 = vpop.f32.mrf.mxu3 }
 0x29e   : > { %v794_v44 = vadd.f32 %v793_v35, %v732_v43 }
 0x2a0   : > { %v834_v46 = vadd.f32 %v1803_v41, %v794_v44  ;;  %v1539_v48 = vpop.eup %1538 }
 0x2a2   : > { %1540 = vtanh.f32 %v834_v46 }
 0x2a5   : > { %v735_v47 = vpop.f32.mrf.mxu3 }
 0x2a6   : > { %v797_v51 = vadd.f32 %v796_v37, %v735_v47  ;;  %v826_v47 = vpop.f32.mrf.mxu0 }
 0x2a8   : > { %v1541_v49 = vpop.eup %1540  ;;  %v835_v53 = vadd.f32 %v1803_v41, %v797_v51 }
 0x2a9   : > { %v865_v52 = vpack.c.bf16 %v1541_v49, %v1539_v48 }
 0x2aa   : > { %1542 = vtanh.f32 %v835_v53 }
 0x2ab   : > { %1421 = vmatmul.msk.bf16.vlgmr.msrb.gmra.mxu1 %vm456_vm1, %v865_v52 }
 0x2ad   : > { %v737_v54 = vpop.f32.mrf.mxu3 }
 0x2ae   : > { %v799_v55 = vadd.f32 %v798_v38, %v737_v54  ;;  %v828_v53 = vpop.f32.mrf.mxu0 }
 0x2b0   : > { %v836_v56 = vadd.f32 %v1803_v41, %v799_v55  ;;  %v1543_v59 = vpop.eup %1542 }
 0x2b2   : > { %1544 = vtanh.f32 %v836_v56 }
 0x2b5   : > { %v740_v58 = vpop.f32.mrf.mxu3 }
 0x2b6   : > { %v802_v61 = vadd.f32 %v801_v45, %v740_v58 }
 0x2b8   : > { %v1545_v60 = vpop.eup %1544  ;;  %v837_v0 = vadd.f32 %v1803_v41, %v802_v61  ;;  %v966_v61 = vlaneseq }
 0x2b9   : > { %v866_v62 = vpack.c.bf16 %v1545_v60, %v1543_v59 }
 0x2ba   : > { %1546 = vtanh.f32 %v837_v0 }
 0x2bb   : > { %1422 = vmatmul.msk.bf16.gmra.mxu1 %vm456_vm1, %v866_v62  ;;  %v1829_v62 = vand.u32 127, %v966_v61 }
 0x2bd   : > { %v742_v1 = vpop.f32.mrf.mxu3  ;;  %vm968_vm2 = vcmp.lt.s32.totalorder %v1829_v62, 5  ;;  %vm1177_vm3 = vcmp.eq.s32.totalorder %v1829_v62, 5 }
 0x2be   : > { %v804_v2 = vadd.f32 %v803_v50, %v742_v1 }
 0x2c0   : > { %v838_v3 = vadd.f32 %v1803_v41, %v804_v2  ;;  %v1547_v5 = vpop.eup %1546 }
 0x2c2   : > { %1548 = vtanh.f32 %v838_v3 }
 0x2c5   : > { %v745_v4 = vpop.f32.mrf.mxu3 }
 0x2c6   : > { %v807_v8 = vadd.f32 %v806_v57, %v745_v4 }
 0x2c8   : > { %v1549_v7 = vpop.eup %1548  ;;  %v839_v10 = vadd.f32 %v1803_v41, %v807_v8 }
 0x2c9   : > { %v867_v9 = vpack.c.bf16 %v1549_v7, %v1547_v5 }
 0x2ca   : > { %1550 = vtanh.f32 %v839_v10 }
 0x2cb   : > { %1423 = vmatmul.msk.bf16.gmra.mxu1 %vm456_vm1, %v867_v9 }
 0x2cd   : > { %v747_v11 = vpop.f32.mrf.mxu3 }
 0x2ce   : > { %v809_v12 = vadd.f32 %v808_v63, %v747_v11  ;;  %v1834_v63 = vld [vmem:[%s2124_s5] ss:$0 sm:$0xff] }
 0x2d0   : > { %v840_v13 = vadd.f32 %v1803_v41, %v809_v12  ;;  %v1551_v16 = vpop.eup %1550 }
 0x2d2   : > { %1552 = vtanh.f32 %v840_v13 }
 0x2d5   : > { %v750_v15 = vpop.f32.mrf.mxu3 }
 0x2d6   : > { %v812_v18 = vadd.f32 %v811_v6, %v750_v15 }
 0x2d8   : > { %v1553_v17 = vpop.eup %1552  ;;  %v841_v21 = vadd.f32 %v1803_v41, %v812_v18 }
 0x2d9   : > { %v868_v19 = vpack.c.bf16 %v1553_v17, %v1551_v16 }
 0x2da   : > { %1554 = vtanh.f32 %v841_v21 }
 0x2db   : > { %1424 = vmatmul.msk.bf16.gmra.mxu1 %vm456_vm1, %v868_v19 }
 0x2dd   : > { %v752_v22 = vpop.f32.mrf.mxu3 }
 0x2de   : > { %v814_v23 = vadd.f32 %v813_v14, %v752_v22 }
 0x2e0   : > { %v842_v24 = vadd.f32 %v1803_v41, %v814_v23  ;;  %v1555_v27 = vpop.eup %1554 }
 0x2e2   : > { %1556 = vtanh.f32 %v842_v24 }
 0x2e5   : > { %v755_v26 = vpop.f32.mrf.mxu3 }
 0x2e6   : > { %v817_v29 = vadd.f32 %v816_v20, %v755_v26 }
 0x2e8   : > { %v1557_v28 = vpop.eup %1556  ;;  %v843_v31 = vadd.f32 %v1803_v41, %v817_v29 }
 0x2e9   : > { %v869_v30 = vpack.c.bf16 %v1557_v28, %v1555_v27 }
 0x2ea   : > { %1558 = vtanh.f32 %v843_v31 }
 0x2eb   : > { %1425 = vmatmul.msk.bf16.gmra.mxu1 %vm456_vm1, %v869_v30 }
 0x2ed   : > { %v757_v32 = vpop.f32.mrf.mxu3 }
 0x2ee   : > { %v819_v33 = vadd.f32 %v818_v25, %v757_v32 }
 0x2f0   : > { %v844_v35 = vadd.f32 %v1803_v41, %v819_v33  ;;  %v1559_v37 = vpop.eup %1558 }
 0x2f2   : > { %1560 = vtanh.f32 %v844_v35 }
 0x2f5   : > { %v760_v36 = vpop.f32.mrf.mxu3 }
 0x2f6   : > { %v822_v40 = vadd.f32 %v821_v34, %v760_v36 }
 0x2f8   : > { %v1561_v38 = vpop.eup %1560  ;;  %v845_v43 = vadd.f32 %v1803_v41, %v822_v40 }
 0x2f9   : > { %v870_v42 = vpack.c.bf16 %v1561_v38, %v1559_v37 }
 0x2fa   : > { %1562 = vtanh.f32 %v845_v43 }
 0x2fb   : > { %1426 = vmatmul.msk.bf16.gmra.mxu1 %vm456_vm1, %v870_v42 }
 0x2fd   : > { %v762_v44 = vpop.f32.mrf.mxu3 }
 0x2fe   : > { %v824_v45 = vadd.f32 %v823_v39, %v762_v44 }
 0x300   : > { %v846_v46 = vadd.f32 %v1803_v41, %v824_v45  ;;  %v1563_v49 = vpop.eup %1562 }
 0x302   : > { %1564 = vtanh.f32 %v846_v46 }
 0x305   : > { %v765_v48 = vpop.f32.mrf.mxu3 }
 0x306   : > { %v827_v51 = vadd.f32 %v826_v47, %v765_v48 }
 0x308   : > { %v1565_v50 = vpop.eup %1564  ;;  %v847_v54 = vadd.f32 %v1803_v41, %v827_v51 }
 0x309   : > { %v871_v52 = vpack.c.bf16 %v1565_v50, %v1563_v49 }
 0x30a   : > { %1566 = vtanh.f32 %v847_v54 }
 0x30b   : > { %1427 = vmatmul.msk.bf16.gmra.mxu1 %vm456_vm1, %v871_v52 }
 0x30d   : > { %v767_v55 = vpop.f32.mrf.mxu3 }
 0x30e   : > { %v829_v56 = vadd.f32 %v828_v53, %v767_v55 }
 0x310   : > { %v848_v57 = vadd.f32 %v1803_v41, %v829_v56  ;;  %v1567_v58 = vpop.eup %1566 }
 0x312   : > { %1568 = vtanh.f32 %v848_v57 }
 0x318   : > { %v1569_v59 = vpop.eup %1568 }
 0x319   : > { %v872_v60 = vpack.c.bf16 %v1569_v59, %v1567_v58 }
 0x31b   : > { %1428 = vmatmul.msk.bf16.vlgmr.msra.gmra.mxu2 %vm456_vm1, %v872_v60 }
 0x328   : > { %v926_v0 = vpop.f32.mrf.mxu1 }
 0x329   : > { %v1838_v41 = vadd.f32 %v1834_v63, %v926_v0 }
 0x32b   : > { %v969_v1 = vsel %vm968_vm2, %v1838_v41, -1e+30 }
 0x32c   : > { %985 = vmax.xlane.f32.xlu0 %v969_v1 }
 0x330   : > { %v928_v2 = vpop.f32.mrf.mxu1 }
 0x331   : > { %v1844_v3 = vadd.f32 %v1834_v63, %v928_v2 }
 0x333   : > { %v970_v4 = vsel %vm968_vm2, %v1844_v3, -1e+30 }
 0x334   : > { %987 = vmax.xlane.f32.xlu0 %v970_v4 }
 0x338   : > { %v931_v5 = vpop.f32.mrf.mxu1 }
 0x339   : > { %v1850_v6 = vadd.f32 %v1834_v63, %v931_v5 }
 0x33b   : > { %v971_v7 = vsel %vm968_vm2, %v1850_v6, -1e+30 }
 0x33c   : > { %989 = vmax.xlane.f32.xlu1 %v971_v7 }
 0x340   : > { %v933_v8 = vpop.f32.mrf.mxu1 }
 0x341   : > { %v1856_v9 = vadd.f32 %v1834_v63, %v933_v8 }
 0x343   : > { %v972_v10 = vsel %vm968_vm2, %v1856_v9, -1e+30 }
 0x344   : > { %991 = vmax.xlane.f32.xlu1 %v972_v10 }
 0x348   : > { %v936_v11 = vpop.f32.mrf.mxu1 }
 0x349   : > { %v1862_v12 = vadd.f32 %v1834_v63, %v936_v11 }
 0x34b   : > { %v973_v13 = vsel %vm968_vm2, %v1862_v12, -1e+30 }
 0x34c   : > { %993 = vmax.xlane.f32.xlu2 %v973_v13 }
 0x350   : > { %v938_v14 = vpop.f32.mrf.mxu1 }
 0x351   : > { %v1868_v15 = vadd.f32 %v1834_v63, %v938_v14 }
 0x353   : > { %v974_v16 = vsel %vm968_vm2, %v1868_v15, -1e+30 }
 0x354   : > { %995 = vmax.xlane.f32.xlu2 %v974_v16 }
 0x358   : > { %v941_v17 = vpop.f32.mrf.mxu1 }
 0x359   : > { %v1874_v18 = vadd.f32 %v1834_v63, %v941_v17 }
 0x35b   : > { %v975_v19 = vsel %vm968_vm2, %v1874_v18, -1e+30 }
 0x35c   : > { %997 = vmax.xlane.f32.xlu0 %v975_v19 }
 0x360   : > { %v943_v20 = vpop.f32.mrf.mxu1 }
 0x361   : > { %v1880_v21 = vadd.f32 %v1834_v63, %v943_v20 }
 0x363   : > { %v976_v22 = vsel %vm968_vm2, %v1880_v21, -1e+30 }
 0x364   : > { %999 = vmax.xlane.f32.xlu1 %v976_v22 }
 0x368   : > { %v946_v23 = vpop.f32.mrf.mxu1 }
 0x369   : > { %v1886_v24 = vadd.f32 %v1834_v63, %v946_v23 }
 0x36b   : > { %v977_v25 = vsel %vm968_vm2, %v1886_v24, -1e+30 }
 0x36c   : > { %1001 = vmax.xlane.f32.xlu2 %v977_v25 }
 0x370   : > { %v948_v26 = vpop.f32.mrf.mxu1 }
 0x371   : > { %v1892_v27 = vadd.f32 %v1834_v63, %v948_v26 }
 0x373   : > { %v978_v28 = vsel %vm968_vm2, %v1892_v27, -1e+30 }
 0x374   : > { %1003 = vmax.xlane.f32.xlu0 %v978_v28 }
 0x378   : > { %v951_v29 = vpop.f32.mrf.mxu1 }
 0x379   : > { %v1898_v30 = vadd.f32 %v1834_v63, %v951_v29 }
 0x37b   : > { %v979_v31 = vsel %vm968_vm2, %v1898_v30, -1e+30 }
 0x37c   : > { %1005 = vmax.xlane.f32.xlu1 %v979_v31 }
 0x380   : > { %v953_v32 = vpop.f32.mrf.mxu1 }
 0x381   : > { %v1904_v33 = vadd.f32 %v1834_v63, %v953_v32 }
 0x383   : > { %v980_v34 = vsel %vm968_vm2, %v1904_v33, -1e+30 }
 0x384   : > { %1007 = vmax.xlane.f32.xlu2 %v980_v34 }
 0x388   : > { %v956_v35 = vpop.f32.mrf.mxu1 }
 0x389   : > { %v1910_v36 = vadd.f32 %v1834_v63, %v956_v35 }
 0x38b   : > { %v981_v37 = vsel %vm968_vm2, %v1910_v36, -1e+30 }
 0x38c   : > { %1009 = vmax.xlane.f32.xlu0 %v981_v37 }
 0x390   : > { %v958_v38 = vpop.f32.mrf.mxu1 }
 0x391   : > { %v1916_v39 = vadd.f32 %v1834_v63, %v958_v38 }
 0x393   : > { %v982_v40 = vsel %vm968_vm2, %v1916_v39, -1e+30 }
 0x394   : > { %1011 = vmax.xlane.f32.xlu1 %v982_v40 }
 0x39e   : > { %v961_v42 = vpop.f32.mrf.mxu2 }
 0x39f   : > { %v1922_v43 = vadd.f32 %v1834_v63, %v961_v42  ;;  %v986_v44 = vpop.xlane.xlu0 %985 }
 0x3a0   : > { %v1925_v45 = vsub.f32 %v1838_v41, %v986_v44 }
 0x3a1   : > { %v983_v46 = vsel %vm968_vm2, %v1922_v43, -1e+30 }
 0x3a2   : > { %v1033_v47 = vmin.f32 %v1925_v45, 0.0  ;;  %1013 = vmax.xlane.f32.xlu2 %v983_v46 }
 0x3a4   : > { %v1049_v48 = vmul.f32 1.442695, %v1033_v47 }
 0x3a6   : > { %1570 = vpow2.f32 %v1049_v48  ;;  %v963_v49 = vpop.f32.mrf.mxu2 }
 0x3a7   : > { %v1932_v50 = vadd.f32 %v1834_v63, %v963_v49  ;;  %v988_v51 = vpop.xlane.xlu0 %987 }
 0x3a8   : > { %v1935_v52 = vsub.f32 %v1844_v3, %v988_v51 }
 0x3a9   : > { %v984_v53 = vsel %vm968_vm2, %v1932_v50, -1e+30 }
 0x3aa   : > { %v1034_v54 = vmin.f32 %v1935_v52, 0.0  ;;  %1015 = vmax.xlane.f32.xlu0 %v984_v53 }
 0x3ac   : > { %v1571_v55 = vpop.eup %1570  ;;  %v1051_v56 = vmul.f32 1.442695, %v1034_v54 }
 0x3ad   : > { %v1081_v57 = vsel %vm968_vm2, %v1571_v55, 0.0 }
 0x3ae   : > { %1572 = vpow2.f32 %v1051_v56  ;;  %1097 = vadd.xlane.f32.xlu1 %v1081_v57 }
 0x3af   : > { %v990_v58 = vpop.xlane.xlu1 %989 }
 0x3b0   : > { %v1944_v59 = vsub.f32 %v1850_v6, %v990_v58 }
 0x3b2   : > { %v1035_v60 = vmin.f32 %v1944_v59, 0.0 }
 0x3b4   : > { %v1573_v61 = vpop.eup %1572  ;;  %v1053_v63 = vmul.f32 1.442695, %v1035_v60 }
 0x3b5   : > { %v1082_v0 = vsel %vm968_vm2, %v1573_v61, 0.0 }
 0x3b6   : > { %1574 = vpow2.f32 %v1053_v63  ;;  %1099 = vadd.xlane.f32.xlu2 %v1082_v0 }
 0x3b7   : > { %v992_v1 = vpop.xlane.xlu1 %991 }
 0x3b8   : > { %v1950_v2 = vsub.f32 %v1856_v9, %v992_v1 }
 0x3ba   : > { %v1036_v4 = vmin.f32 %v1950_v2, 0.0 }
 0x3bc   : > { %v1575_v5 = vpop.eup %1574  ;;  %v1055_v7 = vmul.f32 1.442695, %v1036_v4 }
 0x3bd   : > { %v1083_v8 = vsel %vm968_vm2, %v1575_v5, 0.0 }
 0x3be   : > { %1576 = vpow2.f32 %v1055_v7  ;;  %1101 = vadd.xlane.f32.xlu0 %v1083_v8 }
 0x3bf   : > { %v994_v10 = vpop.xlane.xlu2 %993 }
 0x3c0   : > { %v1956_v11 = vsub.f32 %v1862_v12, %v994_v10 }
 0x3c2   : > { %v1037_v13 = vmin.f32 %v1956_v11, 0.0 }
 0x3c4   : > { %v1577_v14 = vpop.eup %1576  ;;  %v1057_v16 = vmul.f32 1.442695, %v1037_v13 }
 0x3c5   : > { %v1084_v17 = vsel %vm968_vm2, %v1577_v14, 0.0 }
 0x3c6   : > { %1578 = vpow2.f32 %v1057_v16  ;;  %1103 = vadd.xlane.f32.xlu1 %v1084_v17 }
 0x3c7   : > { %v996_v19 = vpop.xlane.xlu2 %995 }
 0x3c8   : > { %v1962_v20 = vsub.f32 %v1868_v15, %v996_v19 }
 0x3ca   : > { %v1038_v22 = vmin.f32 %v1962_v20, 0.0 }
 0x3cc   : > { %v1579_v23 = vpop.eup %1578  ;;  %v1059_v25 = vmul.f32 1.442695, %v1038_v22 }
 0x3cd   : > { %v1085_v26 = vsel %vm968_vm2, %v1579_v23, 0.0 }
 0x3ce   : > { %1580 = vpow2.f32 %v1059_v25  ;;  %1105 = vadd.xlane.f32.xlu2 %v1085_v26 }
 0x3cf   : > { %v998_v28 = vpop.xlane.xlu0 %997 }
 0x3d0   : > { %v1968_v29 = vsub.f32 %v1874_v18, %v998_v28 }
 0x3d2   : > { %v1039_v31 = vmin.f32 %v1968_v29, 0.0 }
 0x3d4   : > { %v1581_v32 = vpop.eup %1580  ;;  %v1061_v34 = vmul.f32 1.442695, %v1039_v31 }
 0x3d5   : > { %v1086_v35 = vsel %vm968_vm2, %v1581_v32, 0.0 }
 0x3d6   : > { %1582 = vpow2.f32 %v1061_v34  ;;  %1107 = vadd.xlane.f32.xlu0 %v1086_v35 }
 0x3d7   : > { %v1000_v37 = vpop.xlane.xlu1 %999 }
 0x3d8   : > { %v1974_v38 = vsub.f32 %v1880_v21, %v1000_v37 }
 0x3da   : > { %v1040_v40 = vmin.f32 %v1974_v38, 0.0 }
 0x3dc   : > { %v1583_v42 = vpop.eup %1582  ;;  %v1063_v44 = vmul.f32 1.442695, %v1040_v40 }
 0x3dd   : > { %v1087_v46 = vsel %vm968_vm2, %v1583_v42, 0.0 }
 0x3de   : > { %1584 = vpow2.f32 %v1063_v44  ;;  %1109 = vadd.xlane.f32.xlu1 %v1087_v46 }
 0x3df   : > { %v1002_v47 = vpop.xlane.xlu2 %1001 }
 0x3e0   : > { %v1980_v48 = vsub.f32 %v1886_v24, %v1002_v47 }
 0x3e2   : > { %v1041_v49 = vmin.f32 %v1980_v48, 0.0 }
 0x3e4   : > { %v1585_v51 = vpop.eup %1584  ;;  %v1065_v53 = vmul.f32 1.442695, %v1041_v49 }
 0x3e5   : > { %v1088_v54 = vsel %vm968_vm2, %v1585_v51, 0.0 }
 0x3e6   : > { %1586 = vpow2.f32 %v1065_v53  ;;  %1111 = vadd.xlane.f32.xlu2 %v1088_v54 }
 0x3e7   : > { %v1004_v55 = vpop.xlane.xlu0 %1003 }
 0x3e8   : > { %v1986_v56 = vsub.f32 %v1892_v27, %v1004_v55 }
 0x3ea   : > { %v1042_v57 = vmin.f32 %v1986_v56, 0.0 }
 0x3ec   : > { %v1587_v58 = vpop.eup %1586  ;;  %v1067_v60 = vmul.f32 1.442695, %v1042_v57 }
 0x3ed   : > { %v1089_v61 = vsel %vm968_vm2, %v1587_v58, 0.0 }
 0x3ee   : > { %1588 = vpow2.f32 %v1067_v60  ;;  %1113 = vadd.xlane.f32.xlu0 %v1089_v61 }
 0x3ef   : > { %v1006_v63 = vpop.xlane.xlu1 %1005 }
 0x3f0   : > { %v1992_v0 = vsub.f32 %v1898_v30, %v1006_v63 }
 0x3f2   : > { %v1043_v1 = vmin.f32 %v1992_v0, 0.0 }
 0x3f4   : > { %v1589_v4 = vpop.eup %1588  ;;  %v1069_v5 = vmul.f32 1.442695, %v1043_v1 }
 0x3f5   : > { %v1090_v7 = vsel %vm968_vm2, %v1589_v4, 0.0 }
 0x3f6   : > { %1590 = vpow2.f32 %v1069_v5  ;;  %1115 = vadd.xlane.f32.xlu1 %v1090_v7 }
 0x3f7   : > { %v1008_v8 = vpop.xlane.xlu2 %1007 }
 0x3f8   : > { %v1998_v10 = vsub.f32 %v1904_v33, %v1008_v8 }
 0x3fa   : > { %v1044_v13 = vmin.f32 %v1998_v10, 0.0 }
 0x3fc   : > { %v1591_v14 = vpop.eup %1590  ;;  %v1071_v16 = vmul.f32 1.442695, %v1044_v13 }
 0x3fd   : > { %v1091_v17 = vsel %vm968_vm2, %v1591_v14, 0.0 }
 0x3fe   : > { %1592 = vpow2.f32 %v1071_v16  ;;  %1117 = vadd.xlane.f32.xlu2 %v1091_v17 }
 0x3ff   : > { %v1010_v19 = vpop.xlane.xlu0 %1009 }
 0x400   : > { %v2004_v22 = vsub.f32 %v1910_v36, %v1010_v19 }
 0x402   : > { %v1045_v23 = vmin.f32 %v2004_v22, 0.0 }
 0x404   : > { %v1593_v25 = vpop.eup %1592  ;;  %v1073_v26 = vmul.f32 1.442695, %v1045_v23 }
 0x405   : > { %v1092_v28 = vsel %vm968_vm2, %v1593_v25, 0.0 }
 0x406   : > { %1594 = vpow2.f32 %v1073_v26  ;;  %1119 = vadd.xlane.f32.xlu0 %v1092_v28 }
 0x407   : > { %v1012_v31 = vpop.xlane.xlu1 %1011 }
 0x408   : > { %v2010_v32 = vsub.f32 %v1916_v39, %v1012_v31 }
 0x40a   : > { %v1046_v34 = vmin.f32 %v2010_v32, 0.0 }
 0x40c   : > { %v1595_v35 = vpop.eup %1594  ;;  %v1075_v37 = vmul.f32 1.442695, %v1046_v34 }
 0x40d   : > { %v1093_v40 = vsel %vm968_vm2, %v1595_v35, 0.0 }
 0x40e   : > { %1596 = vpow2.f32 %v1075_v37  ;;  %1121 = vadd.xlane.f32.xlu1 %v1093_v40 }
 0x414   : > { %v1597_v42 = vpop.eup %1596 }
 0x415   : > { %v1014_v44 = vpop.xlane.xlu2 %1013  ;;  %v1094_v46 = vsel %vm968_vm2, %v1597_v42, 0.0 }
 0x416   : > { %v2018_v47 = vsub.f32 %v1922_v43, %v1014_v44  ;;  %1123 = vadd.xlane.f32.xlu2 %v1094_v46 }
 0x418   : > { %v1047_v49 = vmin.f32 %v2018_v47, 0.0 }
 0x41a   : > { %v1077_v51 = vmul.f32 1.442695, %v1047_v49 }
 0x41c   : > { %1598 = vpow2.f32 %v1077_v51 }
 0x41d   : > { %v1016_v53 = vpop.xlane.xlu0 %1015 }
 0x41e   : > { %v2022_v54 = vsub.f32 %v1932_v50, %v1016_v53 }
 0x420   : > { %v1048_v55 = vmin.f32 %v2022_v54, 0.0 }
 0x421   : > { %v1098_v57 = vpop.xlane.xlu1 %1097 }
 0x422   : > { %v1599_v58 = vpop.eup %1598  ;;  %v1079_v60 = vmul.f32 1.442695, %v1048_v55  ;;  %1600 = vlog2.f32 %v1098_v57 }
 0x423   : > { %v1095_v61 = vsel %vm968_vm2, %v1599_v58, 0.0 }
 0x424   : > { %1602 = vpow2.f32 %v1079_v60  ;;  %1125 = vadd.xlane.f32.xlu0 %v1095_v61 }
 0x428   : > { %v1601_v63 = vpop.eup %1600 }
 0x429   : > { %v1130_v1 = vmul.f32 0.6931472, %v1601_v63  ;;  %v1100_v4 = vpop.xlane.xlu2 %1099 }
 0x42a   : > { %v1603_v5 = vpop.eup %1602  ;;  %1604 = vlog2.f32 %v1100_v4 }
 0x42b   : > { %v1161_v7 = vsub.f32 %v1925_v45, %v1130_v1  ;;  %v1096_v8 = vsel %vm968_vm2, %v1603_v5, 0.0 }
 0x42c   : > { %1127 = vadd.xlane.f32.xlu1 %v1096_v8 }
 0x42d   : > { %v1178_v13 = vsel %vm1177_vm3, %v1838_v41, %v1161_v7 }
 0x42e   : > { %1194 = vst [vmem:[%s2032_s15] sm:$0xff] %v1178_v13 }
 0x430   : > { %v1605_v14 = vpop.eup %1604 }
 0x431   : > { %v1132_v16 = vmul.f32 0.6931472, %v1605_v14  ;;  %v1102_v17 = vpop.xlane.xlu0 %1101 }
 0x432   : > { %1606 = vlog2.f32 %v1102_v17 }
 0x433   : > { %v1162_v19 = vsub.f32 %v1935_v52, %v1132_v16 }
 0x435   : > { %v1179_v45 = vsel %vm1177_vm3, %v1844_v3, %v1162_v19 }
 0x436   : > { %1195 = vst [vmem:[%s2032_s15 + $0x8] sm:$0xff] %v1179_v45 }
 0x438   : > { %v1607_v23 = vpop.eup %1606 }
 0x439   : > { %v1134_v25 = vmul.f32 0.6931472, %v1607_v23  ;;  %v1104_v26 = vpop.xlane.xlu1 %1103 }
 0x43a   : > { %1608 = vlog2.f32 %v1104_v26 }
 0x43b   : > { %v1163_v28 = vsub.f32 %v1944_v59, %v1134_v25 }
 0x43d   : > { %v1180_v41 = vsel %vm1177_vm3, %v1850_v6, %v1163_v28 }
 0x43e   : > { %1196 = vst [vmem:[%s2032_s15 + $0x10] sm:$0xff] %v1180_v41 }
 0x440   : > { %v1609_v31 = vpop.eup %1608 }
 0x441   : > { %v1136_v52 = vmul.f32 0.6931472, %v1609_v31  ;;  %v1106_v34 = vpop.xlane.xlu2 %1105 }
 0x442   : > { %1610 = vlog2.f32 %v1106_v34 }
 0x443   : > { %v1164_v35 = vsub.f32 %v1950_v2, %v1136_v52 }
 0x445   : > { %v1181_v3 = vsel %vm1177_vm3, %v1856_v9, %v1164_v35 }
 0x446   : > { %1197 = vst [vmem:[%s2032_s15 + $0x18] sm:$0xff] %v1181_v3 }
 0x448   : > { %v1611_v37 = vpop.eup %1610 }
 0x449   : > { %v1138_v59 = vmul.f32 0.6931472, %v1611_v37  ;;  %v1108_v40 = vpop.xlane.xlu0 %1107 }
 0x44a   : > { %1612 = vlog2.f32 %v1108_v40 }
 0x44b   : > { %v1165_v42 = vsub.f32 %v1956_v11, %v1138_v59 }
 0x44d   : > { %v1182_v6 = vsel %vm1177_vm3, %v1862_v12, %v1165_v42 }
 0x44e   : > { %1198 = vst [vmem:[%s2032_s15 + $0x20] sm:$0xff] %v1182_v6 }
 0x450   : > { %v1613_v44 = vpop.eup %1612 }
 0x451   : > { %v1140_v2 = vmul.f32 0.6931472, %v1613_v44  ;;  %v1110_v46 = vpop.xlane.xlu1 %1109 }
 0x452   : > { %1614 = vlog2.f32 %v1110_v46 }
 0x453   : > { %v1166_v49 = vsub.f32 %v1962_v20, %v1140_v2 }
 0x455   : > { %v1183_v9 = vsel %vm1177_vm3, %v1868_v15, %v1166_v49 }
 0x456   : > { %1199 = vst [vmem:[%s2032_s15 + $0x28] sm:$0xff] %v1183_v9 }
 0x458   : > { %v1615_v51 = vpop.eup %1614 }
 0x459   : > { %v1142_v11 = vmul.f32 0.6931472, %v1615_v51  ;;  %v1112_v53 = vpop.xlane.xlu2 %1111 }
 0x45a   : > { %1616 = vlog2.f32 %v1112_v53 }
 0x45b   : > { %v1167_v55 = vsub.f32 %v1968_v29, %v1142_v11 }
 0x45d   : > { %v1184_v12 = vsel %vm1177_vm3, %v1874_v18, %v1167_v55 }
 0x45e   : > { %1200 = vst [vmem:[%s2032_s15 + $0x30] sm:$0xff] %v1184_v12 }
 0x460   : > { %v1617_v57 = vpop.eup %1616 }
 0x461   : > { %v1144_v20 = vmul.f32 0.6931472, %v1617_v57  ;;  %v1114_v58 = vpop.xlane.xlu0 %1113 }
 0x462   : > { %1618 = vlog2.f32 %v1114_v58 }
 0x463   : > { %v1168_v60 = vsub.f32 %v1974_v38, %v1144_v20 }
 0x465   : > { %v1185_v15 = vsel %vm1177_vm3, %v1880_v21, %v1168_v60 }
 0x466   : > { %1201 = vst [vmem:[%s2032_s15 + $0x38] sm:$0xff] %v1185_v15 }
 0x468   : > { %v1619_v61 = vpop.eup %1618 }
 0x469   : > { %v1146_v29 = vmul.f32 0.6931472, %v1619_v61  ;;  %v1116_v63 = vpop.xlane.xlu1 %1115 }
 0x46a   : > { %1620 = vlog2.f32 %v1116_v63 }
 0x46b   : > { %v1169_v1 = vsub.f32 %v1980_v48, %v1146_v29 }
 0x46d   : > { %v1186_v18 = vsel %vm1177_vm3, %v1886_v24, %v1169_v1 }
 0x46e   : > { %1202 = vst [vmem:[%s2032_s15 + $0x40] sm:$0xff] %v1186_v18 }
 0x470   : > { %v1621_v4 = vpop.eup %1620 }
 0x471   : > { %v1148_v38 = vmul.f32 0.6931472, %v1621_v4  ;;  %v1118_v5 = vpop.xlane.xlu2 %1117 }
 0x472   : > { %1622 = vlog2.f32 %v1118_v5 }
 0x473   : > { %v1170_v7 = vsub.f32 %v1986_v56, %v1148_v38 }
 0x475   : > { %v1187_v21 = vsel %vm1177_vm3, %v1892_v27, %v1170_v7 }
 0x476   : > { %1203 = vst [vmem:[%s2032_s15 + $0x48] sm:$0xff] %v1187_v21 }
 0x478   : > { %v1623_v8 = vpop.eup %1622 }
 0x479   : > { %v1150_v48 = vmul.f32 0.6931472, %v1623_v8  ;;  %v1120_v13 = vpop.xlane.xlu0 %1119 }
 0x47a   : > { %1624 = vlog2.f32 %v1120_v13 }
 0x47b   : > { %v1171_v14 = vsub.f32 %v1992_v0, %v1150_v48 }
 0x47d   : > { %v1188_v24 = vsel %vm1177_vm3, %v1898_v30, %v1171_v14 }
 0x47e   : > { %1204 = vst [vmem:[%s2032_s15 + $0x50] sm:$0xff] %v1188_v24 }
 0x480   : > { %v1625_v16 = vpop.eup %1624 }
 0x481   : > { %v1152_v56 = vmul.f32 0.6931472, %v1625_v16  ;;  %v1122_v17 = vpop.xlane.xlu1 %1121 }
 0x482   : > { %1626 = vlog2.f32 %v1122_v17 }
 0x483   : > { %v1172_v27 = vsub.f32 %v1998_v10, %v1152_v56 }
 0x485   : > { %v1189_v19 = vsel %vm1177_vm3, %v1904_v33, %v1172_v27 }
 0x486   : > { %1205 = vst [vmem:[%s2032_s15 + $0x58] sm:$0xff] %v1189_v19 }
 0x488   : > { %v1627_v45 = vpop.eup %1626 }
 0x489   : > { %v1154_v0 = vmul.f32 0.6931472, %v1627_v45  ;;  %v1124_v23 = vpop.xlane.xlu2 %1123 }
 0x48a   : > { %1628 = vlog2.f32 %v1124_v23 }
 0x48b   : > { %v1173_v25 = vsub.f32 %v2004_v22, %v1154_v0 }
 0x48d   : > { %v1190_v30 = vsel %vm1177_vm3, %v1910_v36, %v1173_v25 }
 0x48e   : > { %1206 = vst [vmem:[%s2032_s15 + $0x60] sm:$0xff] %v1190_v30 }
 0x490   : > { %v1629_v26 = vpop.eup %1628 }
 0x491   : > { %v1156_v28 = vmul.f32 0.6931472, %v1629_v26 }
 0x493   : > { %v1174_v10 = vsub.f32 %v2010_v32, %v1156_v28 }
 0x495   : > { %v1191_v33 = vsel %vm1177_vm3, %v1916_v39, %v1174_v10 }
 0x496   : > { %1207 = vst [vmem:[%s2032_s15 + $0x68] sm:$0xff] %v1191_v33 }
 0x497   : > { %v1126_v41 = vpop.xlane.xlu0 %1125 }
 0x498   : > { %1630 = vlog2.f32 %v1126_v41 }
 0x49e   : > { %v1631_v31 = vpop.eup %1630 }
 0x49f   : > { %v1158_v22 = vmul.f32 0.6931472, %v1631_v31  ;;  %v1128_v52 = vpop.xlane.xlu1 %1127 }
 0x4a0   : > { %1632 = vlog2.f32 %v1128_v52 }
 0x4a1   : > { %v1175_v34 = vsub.f32 %v2018_v47, %v1158_v22 }
 0x4a3   : > { %v1192_v36 = vsel %vm1177_vm3, %v1922_v43, %v1175_v34 }
 0x4a4   : > { %1208 = vst [vmem:[%s2032_s15 + $0x70] sm:$0xff] %v1192_v36 }
 0x4a6   : > { %v1633_v32 = vpop.eup %1632 }
 0x4a7   : > { %v1160_v35 = vmul.f32 0.6931472, %v1633_v32 }
 0x4a9   : > { %v1176_v3 = vsub.f32 %v2022_v54, %v1160_v35 }
 0x4ab   : > { %v1193_v39 = vsel %vm1177_vm3, %v1932_v50, %v1176_v3 }
 0x4ac   : > { %1209 = vst [vmem:[%s2032_s15 + $0x78] sm:$0xff] %v1193_v39 }
 0x4ad PF: > { %s16_s21 = sadd.s32 1, %s1640_s21  }
 0x4ae   : > { %p13_p5 = scmp.ge.s32.totalorder %s16_s21, 5  }
 0x4b0   :  { %15 = sbr.rel (!%p13_p5) target bundleno = 1 (0x1), region = 77 }

</bundles_post_ra>
